<compile_context>
chip_gen: v7x
topology: tpu7x:2x2x1
jax: 0.10.0
libtpu: 0.0.40
codegen_flags: <defaults>
</compile_context>

<pallas_src>
import jax
import jax.numpy as jnp
from jax import lax
from jax.experimental import pallas as pl
from jax.experimental.pallas import tpu as pltpu


# lhs (M,K) x rhs (N,K) -> (M,N): contract the last dim of both operands
# ("NT" matmul, same dimension numbers the TPU flash-attention kernel uses).
_NT_DIMS = (((1,), (1,)), ((), ()))


def _disc_kernel(x_ref, w_ref, b_ref, o_ref):
    # x_ref: (TB, 17) batch tile (native input dtype)
    # w_ref: (8, 17)  fused weight row, replicated across 8 sublanes
    # b_ref: (1, 1)   fused bias
    # o_ref: (1, TB)  lane-dense output tile (batch on the lane axis)
    x = x_ref[...].astype(jnp.float32)                       # in-kernel cast (VPU)
    h = lax.dot_general(w_ref[...], x, dimension_numbers=_NT_DIMS,
                        preferred_element_type=jnp.float32)  # (8, TB)
    y = h[0:1, :] + b_ref[...]                               # (1, TB)
    o_ref[...] = jax.nn.sigmoid(y)


def _round_up(n, m):
    return (n + m - 1) // m * m


def discriminator_forward(x, params, *, block_rows=8192):
    """x: (B, 17) array (any float dtype). Returns (B,) float32."""
    if x.ndim != 2 or x.shape[1] != 17:
        raise ValueError(f"expected (B, 17) input, got {x.shape}")
    B = x.shape[0]
    w1, b1, w2, b2, w3, b3 = params

    # Collapse the three purely-linear layers host-side (exact up to f32 rounding).
    w_fused = (w1 @ w2) @ w3                               # (17, 1)
    b_fused = ((b1 @ w2 + b2) @ w3 + b3).reshape(1, 1)     # (1, 1)
    # Replicate the fused weight row over 8 sublanes so the matmul LHS is
    # sublane-aligned; all 8 result rows are identical, row 0 is stored.
    w_rows = jnp.tile(w_fused.reshape(1, 17), (8, 1)).astype(jnp.float32)
    b_fused = b_fused.astype(jnp.float32)

    # Batch tiling: lane-aligned tile of rows, 1-D grid over the batch.
    tb = min(block_rows, _round_up(B, 128))
    b_pad = _round_up(B, tb)
    if b_pad != B:
        x = jnp.pad(x, ((0, b_pad - B), (0, 0)))
    n_tiles = b_pad // tb

    out = pl.pallas_call(
        _disc_kernel,
        out_shape=jax.ShapeDtypeStruct((1, b_pad), jnp.float32),
        grid=(n_tiles,),
        in_specs=[
            pl.BlockSpec((tb, 17), lambda i: (i, 0)),   # streamed batch tile
            pl.BlockSpec((8, 17), lambda i: (0, 0)),    # resident fused weight
            pl.BlockSpec((1, 1), lambda i: (0, 0)),     # resident fused bias
        ],
        out_specs=pl.BlockSpec((1, tb), lambda i: (0, i)),  # lane-dense output
        compiler_params=pltpu.CompilerParams(
            dimension_semantics=("parallel",)),
    )(x, w_rows, b_fused)

    # PyTorch: x.view(x.size(0)) -> (B,)
    return out[0, :B]


def init_params(key):
    """Deterministic init mimicking nn.Linear default U(-1/sqrt(in), 1/sqrt(in)).

    Weights are stored transposed, shape (in_features, out_features), plus a
    (1, out_features) bias.
    """
    dims = [(17, 8), (8, 4), (4, 1)]
    params = []
    for i, (fin, fout) in enumerate(dims):
        kw, kb = jax.random.split(jax.random.fold_in(key, i))
        bound = 1.0 / jnp.sqrt(float(fin))
        w = jax.random.uniform(kw, (fin, fout), jnp.float32, -bound, bound)
        b = jax.random.uniform(kb, (1, fout), jnp.float32, -bound, bound)
        params += [w, b]
    return tuple(params)


def _reference(x, params):
    """Plain-JAX reference (faithful 3-layer form) for sanity checking."""
    w1, b1, w2, b2, w3, b3 = params
    h = x.astype(jnp.float32)
    h = h @ w1 + b1
    h = h @ w2 + b2
    h = h @ w3 + b3
    return jax.nn.sigmoid(h).reshape(h.shape[0])


if __name__ == "__main__":
    key = jax.random.PRNGKey(0)
    k_x, k_x2, k_p = jax.random.split(key, 3)
    params = init_params(k_p)

    # Small batch, single tile.
    B = 8
    x = jax.random.normal(k_x, (B, 17), dtype=jnp.float32)
    y = jax.block_until_ready(discriminator_forward(x, params))
    y_ref = _reference(x, params)
    assert y.shape == (B,)
    assert jnp.allclose(y, y_ref, atol=1e-5, rtol=1e-5), (y, y_ref)

    # Non-divisible batch, multi-tile grid (exercises tiling + padding path).
    B2 = 300
    x2 = jax.random.normal(k_x2, (B2, 17), dtype=jnp.float32)
    y2 = jax.block_until_ready(discriminator_forward(x2, params, block_rows=128))
    y2_ref = _reference(x2, params)
    assert y2.shape == (B2,)
    assert jnp.allclose(y2, y2_ref, atol=1e-5, rtol=1e-5)

    print("KERNEL_OK")
</pallas_src>

<mosaic_0001>
module attributes {stable_mosaic.version = 11 : i64} {
  func.func @_disc_kernel(%arg0: i32, %arg1: memref<128x17xf32, #tpu.memory_space<vmem>>, %arg2: memref<8x17xf32, #tpu.memory_space<vmem>>, %arg3: memref<1x1xf32, #tpu.memory_space<vmem>>, %arg4: memref<1x128xf32, #tpu.memory_space<vmem>>) attributes {dimension_semantics = [#tpu.dimension_semantics<parallel>], iteration_bounds = array<i64: 1>, scalar_prefetch = 0 : i64, scratch_operands = 0 : i64, tpu.core_type = #tpu.core_type<tc>, window_params = [{transform_indices = @transform_0, window_bounds = array<i64: 128, 17>}, {pipeline_mode = #tpu.pipeline_mode<synchronous>, transform_indices = @transform_1, window_bounds = array<i64: 8, 17>}, {pipeline_mode = #tpu.pipeline_mode<synchronous>, transform_indices = @transform_2, window_bounds = array<i64: 1, 1>}, {transform_indices = @transform_3, window_bounds = array<i64: 1, 128>}]} {
    %c0 = arith.constant 0 : index
    %c0_0 = arith.constant 0 : index
    %0 = vector.load %arg1[%c0, %c0_0] : memref<128x17xf32, #tpu.memory_space<vmem>>, vector<128x17xf32>
    %c0_1 = arith.constant 0 : index
    %c0_2 = arith.constant 0 : index
    %1 = vector.load %arg2[%c0_1, %c0_2] : memref<8x17xf32, #tpu.memory_space<vmem>>, vector<8x17xf32>
    %cst = arith.constant dense<0.000000e+00> : vector<8x128xf32>
    %2 = tpu.matmul %1, %0, %cst {dimension_numbers = #tpu.dot_dimension_numbers<[1], [1], [0], [0], [0, 0, 1, 0], [], []>} : vector<8x17xf32>, vector<128x17xf32>, vector<8x128xf32> -> vector<8x128xf32>
    %3 = vector.extract_strided_slice %2 {offsets = [0, 0], sizes = [1, 128], strides = [1, 1]} : vector<8x128xf32> to vector<1x128xf32>
    %c0_3 = arith.constant 0 : index
    %c0_4 = arith.constant 0 : index
    %4 = vector.load %arg3[%c0_3, %c0_4] : memref<1x1xf32, #tpu.memory_space<vmem>>, vector<1x1xf32>
    %5 = vector.broadcast %4 : vector<1x1xf32> to vector<1x128xf32>
    %6 = arith.addf %3, %5 : vector<1x128xf32>
    %7 = arith.negf %6 : vector<1x128xf32>
    %8 = math.exp %7 : vector<1x128xf32>
    %cst_5 = arith.constant 1.000000e+00 : f32
    %9 = vector.broadcast %cst_5 : f32 to vector<1x128xf32>
    %10 = arith.addf %9, %8 : vector<1x128xf32>
    %11 = arith.divf %9, %10 : vector<1x128xf32>
    %c0_6 = arith.constant 0 : index
    %c0_7 = arith.constant 0 : index
    %12 = vector.load %arg4[%c0_6, %c0_7] : memref<1x128xf32, #tpu.memory_space<vmem>>, vector<1x128xf32>
    tpu.vector_store %arg4[%c0_6, %c0_7], %11 {strides = array<i32>} : memref<1x128xf32, #tpu.memory_space<vmem>>, vector<1x128xf32>,
    return
  }
  func.func @transform_0(%arg0: i32) -> (i32, i32) {
    %c0_i32 = arith.constant 0 : i32
    %c0_i32_0 = arith.constant 0 : i32
    return %arg0, %c0_i32 : i32, i32
  }
  func.func @transform_1(%arg0: i32) -> (i32, i32) {
    %c0_i32 = arith.constant 0 : i32
    %c0_i32_0 = arith.constant 0 : i32
    %c0_i32_1 = arith.constant 0 : i32
    return %c0_i32, %c0_i32_0 : i32, i32
  }
  func.func @transform_2(%arg0: i32) -> (i32, i32) {
    %c0_i32 = arith.constant 0 : i32
    %c0_i32_0 = arith.constant 0 : i32
    %c0_i32_1 = arith.constant 0 : i32
    return %c0_i32, %c0_i32_0 : i32, i32
  }
  func.func @transform_3(%arg0: i32) -> (i32, i32) {
    %c0_i32 = arith.constant 0 : i32
    %c0_i32_0 = arith.constant 0 : i32
    return %c0_i32, %arg0 : i32, i32
  }
}

</mosaic_0001>

<bundles_post_ra>
// kernel: tpu_custom_call.1
= control target key start
LH: loop header
LB: loop body
LE: loop exit
PB: predicated region body
PF: predicated region fallthrough
CT: control target
= control target key end

     0   :  { %s438_s0 = inlined_call_operand.vmem [shape: f32[128,17], index: 0, kind: input, shape index: {}]   ;;  %s439_s1 = inlined_call_operand.vmem [shape: f32[8,17], index: 1, kind: input, shape index: {}]   ;;  %s440_s2 = inlined_call_operand.<no memory space> [shape: f32[1,1], index: 2, kind: input, shape index: {}]   ;;  %s441_s3 = inlined_call_operand.hbm [shape: f32[1,128], index: 3, kind: output, shape index: {}]  }
   0x1   :  { %v8_v0 = vstv %s440_s2 }
   0x2   :  { %9 = vst [vmem:[#allocation2] sm:$0x1] %v8_v0 }
   0x3   :  { %v17_v1 = vld [vmem:[%s438_s0] sm:$0xff]  ;;  %v18_v2 = vld [vmem:[%s438_s0 + $0x8] sm:$0xff]  ;;  %vm34_vm0 = vcmask 138240   ;;  %v324_v3 = vmov 0.0|0.0   ;;  %vm325_vm2 = vmmov 0   ;;  %v326_v6 = vmov 0.0  }
   0x4   :  { %258 = vmatprep.subr.bf16.mxu0 %v324_v3  ;;  %v259_v4 = vpack.c.bf16 %v18_v2, %v17_v1  ;;  %vm360_vm1 = vmpackc.low %vm34_vm0, %vm34_vm0  ;;  %255 = vmatprep.mubr.msk.f32.mxu0 %vm325_vm2, %v326_v6  ;;  %v327_v7 = vmov 0   ;;  %v19_v8 = vld [vmem:[%s438_s0 + $0x10] sm:$0xff]  ;;  %v20_v9 = vld [vmem:[%s438_s0 + $0x18] sm:$0xff] }
   0x5   :  { %295 = vset.pattern.permute.xlu0 %v327_v7 }
   0x6   :  { %261 = vmatpush3.bf16.xpose.msk.msra.mxu0 %vm360_vm1, %v259_v4 }
   0x7   :  { %262 = vmatprep.subr.bf16.mxu0 %v324_v3 }
   0x9   :  { %v156_v10 = vld [vmem:[#allocation2] sm:$0x1] }
   0xa   :  { %10 = vsyncpa [#allocation4], 0  ;;  %v263_v11 = vpack.c.bf16 %v20_v9, %v19_v8  ;;  %159 = vperm.xlu0 %295, %v156_v10   ;;  %v21_v12 = vld [vmem:[%s438_s0 + $0x20] sm:$0xff]  ;;  %v22_v13 = vld [vmem:[%s438_s0 + $0x28] sm:$0xff]  ;;  %v162_v31 = vlaneseq }
   0xb   :  { %v267_v14 = vpack.c.bf16 %v22_v13, %v21_v12  ;;  %v23_v15 = vld [vmem:[%s438_s0 + $0x30] sm:$0xff]  ;;  %v24_v16 = vld [vmem:[%s438_s0 + $0x38] sm:$0xff]  ;;  %v25_v18 = vld [vmem:[%s438_s0 + $0x40] sm:$0xff] }
   0xc   :  { %v271_v17 = vpack.c.bf16 %v24_v16, %v23_v15  ;;  %v26_v19 = vld [vmem:[%s438_s0 + $0x48] sm:$0xff]  ;;  %v27_v21 = vld [vmem:[%s438_s0 + $0x50] sm:$0xff]  ;;  %v28_v22 = vld [vmem:[%s438_s0 + $0x58] sm:$0xff]  ;;  %v163_v32 = vshrl.u32 %v162_v31, 7 }
   0xd   :  { %v275_v20 = vpack.c.bf16 %v26_v19, %v25_v18  ;;  %v279_v23 = vpack.c.bf16 %v28_v22, %v27_v21  ;;  %v29_v24 = vld [vmem:[%s438_s0 + $0x60] sm:$0xff]  ;;  %v30_v25 = vld [vmem:[%s438_s0 + $0x68] sm:$0xff]  ;;  %v31_v27 = vld [vmem:[%s438_s0 + $0x70] sm:$0xff] }
   0xe   :  { %265 = vmatpush3.bf16.xpose.msk.msra.mxu0 %vm360_vm1, %v263_v11  ;;  %v283_v26 = vpack.c.bf16 %v30_v25, %v29_v24  ;;  %v32_v28 = vld [vmem:[%s438_s0 + $0x78] sm:$0xff]  ;;  %v33_v30 = vld [vmem:[%s439_s1] sm:$0xff]  ;;  %v164_v33 = vsub.s32 0, %v163_v32  ;;  %s328_s0 = smov [#allocation3]  }
   0xf   :  { %266 = vmatprep.subr.bf16.mxu0 %v324_v3  ;;  %v287_v29 = vpack.c.bf16 %v32_v28, %v31_v27  ;;  %s180_s19 = sshll.u32 %s328_s0, 4  ;;  %s181_s19 = int_to_ptr.vmem [resolvable:$true] %s180_s19 }
  0x10   :  { %s300_s1 = scalar_lea.vmem %s181_s19, 16  ;;  %s304_s20 = scalar_lea.vmem %s181_s19, 32 }
  0x11   :  { %p301_p0 = scmp.ne.s32.totalorder %s181_s19, %s300_s1  ;;  %p305_p1 = scmp.lt.s32.totalorder %s181_s19, %s181_s19 }
  0x12   :  { %p306_p2 = scmp.lt.s32.totalorder %s304_s20, %s300_s1 }
  0x14   :  { %p307_p3 = por %p306_p2, %p305_p1 }
  0x16   :  { %269 = vmatpush3.bf16.xpose.msk.msra.mxu0 %vm360_vm1, %v267_v14  ;;  %p308_p4 = pnand %p307_p3, %p301_p0 }
  0x17   :  { %270 = vmatprep.subr.bf16.mxu0 %v324_v3 }
  0x1e   :  { %273 = vmatpush3.bf16.xpose.msk.msra.mxu0 %vm360_vm1, %v271_v17 }
  0x1f   :  { %274 = vmatprep.subr.bf16.mxu0 %v324_v3 }
  0x26   :  { %277 = vmatpush3.bf16.xpose.msk.msra.mxu0 %vm360_vm1, %v275_v20 }
  0x27   :  { %278 = vmatprep.subr.bf16.mxu0 %v324_v3 }
  0x2e   :  { %281 = vmatpush3.bf16.xpose.msk.msra.mxu0 %vm360_vm1, %v279_v23 }
  0x2f   :  { %282 = vmatprep.subr.bf16.mxu0 %v324_v3 }
  0x36   :  { %285 = vmatpush3.bf16.xpose.msk.msra.mxu0 %vm360_vm1, %v283_v26 }
  0x37   :  { %286 = vmatprep.subr.bf16.mxu0 %v324_v3 }
  0x3e   :  { %289 = vmatpush3.bf16.xpose.msk.msra.mxu0 %vm360_vm1, %v287_v29 }
  0x45   :  { %256 = vmatmul.mubr.msk.f32.vlgmr.msra.gmra.mrb[0].mxu0 %vm34_vm0, %v33_v30 }
  0x89   :  { %v160_v34 = vpop.permute.xlu0 %159 }
  0x8a   :  { %v165_v35 = vrot.slane %v160_v34, %v164_v33 }
 0x118   :  { %v152_v36 = vpop.f32.mrb[0].mxu0 }
 0x119   :  { %v166_v37 = vadd.f32 %v165_v35, %v152_v36  ;;  %v257_v38 = vpop.f32.mrb[1].mxu0 }
 0x11b   :  { %v205_v39 = vmul.f32 -1.442695, %v166_v37 }
 0x11d   :  { %296 = vpow2.f32 %v205_v39 }
 0x127   :  { %v297_v40 = vpop.eup %296 }
 0x128   :  { %v170_v41 = vadd.f32 1.0, %v297_v40 }
 0x12a   :  { %298 = vrcp.f32 %v170_v41 }
 0x134   :  { %v299_v42 = vpop.eup %298 }
 0x135   :  { %173 = vst [vmem:[#allocation3] sm:$0x1] %v299_v42 }
 0x136   :  { %311 = shalt.err (!%p308_p4)
}
 0x137   :  { %s312_s23 = scalar_lea.hbm %s441_s3, 16 }
 0x138   :  { %p313_p5 = scmp.ne.s32.totalorder %s441_s3, %s312_s23  ;;  %p316_p6 = scmp.lt.u32.totalorder %s312_s23, %s441_s3 }
 0x13a   :  { %p318_p7 = pnand %p316_p6, %p313_p5 }
 0x13c   :  { %321 = shalt.err (!%p318_p7)
}
 0x13d   :  { %183 = dma.vmem_to_hbm [thread:$0]  %s181_s19, 16, %s441_s3, [#allocation4]  }
 0x13e   :  { %322 = dma.done.wait [#allocation4], 16  }
 0x13f   :  { %323 = vsyncadd [#allocation4], 4294967280 }
 0x140   :  { %187 = vsyncpa [#allocation4], 1 }

</bundles_post_ra>
